<compile_context>
chip_gen: v7x
topology: tpu7x:2x2x1
jax: 0.10.0
libtpu: 0.0.40
codegen_flags: <defaults>
</compile_context>

<pallas_src>
import jax
import jax.numpy as jnp
from jax.experimental import pallas as pl
from jax.experimental.pallas import tpu as pltpu


def _round_up(x, m):
    return (x + m - 1) // m * m


def _gate_kernel(t_ref, arc_ref, brs_ref, awc_ref, bws_ref, abe_ref, baf_ref,
                 wt_ref, wa_ref, wb_ref, bias_ref,
                 o_r_ref, o_w_ref, o_v_ref):
    # Shared text contribution (same Linear layer for all three branches),
    # accumulated in f32 on the MXU.
    base = (jnp.dot(t_ref[...], wt_ref[...],
                    preferred_element_type=jnp.float32)
            + bias_ref[...])
    wa = wa_ref[...]                                      # [D, D]
    wb = wb_ref[...]                                      # [D, D]

    def branch(a_ref, b_ref, o_ref):
        a = a_ref[...]                                    # [tm, D]
        b = b_ref[...]                                    # [tm, D]
        # Two accumulating dots (no [tm, 2D] concat buffer in VMEM).
        z = (base
             + jnp.dot(a, wa, preferred_element_type=jnp.float32)
             + jnp.dot(b, wb, preferred_element_type=jnp.float32))
        # softmax over features in f32; only the prob of index 0 is needed,
        # so the numerator exp() runs on the [tm, 1] lane-0 slice only.
        m = jnp.max(z, axis=-1, keepdims=True)
        s = jnp.sum(jnp.exp(z - m), axis=-1, keepdims=True)
        # NOTE: approx reciprocal (EUP slot) -> ~1e-3 relative deviation of
        # the gate vs. the exact PyTorch softmax (intentional).
        g = jnp.exp(z[:, 0:1] - m) * pl.reciprocal(s, approx=True)
        a_f = a.astype(jnp.float32)
        b_f = b.astype(jnp.float32)
        o_ref[...] = (b_f + g * (a_f - b_f)).astype(o_ref.dtype)

    branch(arc_ref, brs_ref, o_r_ref)    # React:  comet  vs sbert
    branch(awc_ref, bws_ref, o_w_ref)    # Want:   comet  vs sbert
    branch(abe_ref, baf_ref, o_v_ref)    # Visual: before vs after


def gate_module_forward(text_emb, xReact_comet, xWant_comet,
                        xReact_sbert, xWant_sbert, xBefore, xAfter,
                        W, bias, *, tm=1024, out_dtype=None):
    """Pallas implementation of GateModule.forward.

    Inputs are [B, S, D] (D = text_feat_dim = relation_feat_dim) in their
    native dtype (no wrapper-side cast/copy).  W is the Linear weight
    [D, 3*D] (PyTorch out x in), bias [D].  Returns three [B, S, D] arrays.
    """
    B, S, D = text_emb.shape
    M = B * S
    out_dtype = out_dtype or text_emb.dtype

    # Row tile: multiple of 16 (sublane packing), large to amortize the
    # ~0.35us per-grid-step overhead, but clamped so the single "parallel"
    # row axis keeps >= 2 steps when there is enough work (v7x has 2 TCs).
    tm_eff = min(tm, M)
    if M > 256:
        tm_eff = min(tm_eff, -(-M // 2))
    tm_eff = _round_up(tm_eff, 16)
    grid = pl.cdiv(M, tm_eff)
    # Non-divisible tail block: OOB rows read unspecified data (rows are
    # independent, so any inf/NaN stays in those rows) and their output
    # writes are discarded by Pallas.  Do NOT add cross-row reductions
    # without masking the tail.

    def flat(x):
        return x.reshape(M, D)          # contiguous reshape: no HBM copy

    # Split the Linear weight [D, 3D] into three [D, D] slots, transposed so
    # the kernel runs row-major [tm, D] @ [D, D] matmuls on the MXU.
    Wt = jnp.transpose(W[:, :D])                 # text slot
    Wa = jnp.transpose(W[:, D:2 * D])            # comet / before slot
    Wb = jnp.transpose(W[:, 2 * D:])             # sbert / after  slot
    b2d = bias.reshape(1, D).astype(jnp.float32)

    row_spec = pl.BlockSpec((tm_eff, D), lambda i: (i, 0))
    w_spec = pl.BlockSpec((D, D), lambda i: (0, 0))
    bias_spec = pl.BlockSpec((1, D), lambda i: (0, 0))

    out_shape = jax.ShapeDtypeStruct((M, D), out_dtype)

    o_r, o_w, o_v = pl.pallas_call(
        _gate_kernel,
        out_shape=(out_shape, out_shape, out_shape),
        grid_spec=pltpu.PrefetchScalarGridSpec(
            num_scalar_prefetch=0,
            grid=(grid,),
            in_specs=[row_spec] * 7 + [w_spec, w_spec, w_spec, bias_spec],
            out_specs=[row_spec, row_spec, row_spec],
        ),
        compiler_params=pltpu.CompilerParams(
            dimension_semantics=("parallel",),
            vmem_limit_bytes=32 * 1024 * 1024),
    )(flat(text_emb), flat(xReact_comet), flat(xReact_sbert),
      flat(xWant_comet), flat(xWant_sbert), flat(xBefore), flat(xAfter),
      Wt, Wa, Wb, b2d)

    def unflat(o):
        return o.reshape(B, S, D)

    return unflat(o_r), unflat(o_w), unflat(o_v)


def _reference(text_emb, xrc, xwc, xrs, xws, xbe, xaf, W, bias):
    """Plain-JAX f32 reference matching the PyTorch forward exactly."""
    def lin(x):
        return x @ W.T + bias

    def branch(a, b):
        z = lin(jnp.concatenate((text_emb, a, b), axis=-1))
        g = jax.nn.softmax(z, axis=-1)[:, :, 0:1]
        return g * a + (1.0 - g) * b

    return branch(xrc, xrs), branch(xwc, xws), branch(xbe, xaf)


if __name__ == "__main__":
    B, S, D = 2, 8, 128          # batch, seq, text_feat_dim == relation_feat_dim
    key = jax.random.PRNGKey(0)
    ks = jax.random.split(key, 9)

    text_emb = jax.random.normal(ks[0], (B, S, D), jnp.float32)
    xReact_comet = jax.random.normal(ks[1], (B, S, D), jnp.float32)
    xWant_comet = jax.random.normal(ks[2], (B, S, D), jnp.float32)
    xReact_sbert = jax.random.normal(ks[3], (B, S, D), jnp.float32)
    xWant_sbert = jax.random.normal(ks[4], (B, S, D), jnp.float32)
    xBefore = jax.random.normal(ks[5], (B, S, D), jnp.float32)
    xAfter = jax.random.normal(ks[6], (B, S, D), jnp.float32)

    # Deterministic "Linear(3D -> D)" parameters (PyTorch-style uniform init).
    fan_in = 3 * D
    bound = 1.0 / jnp.sqrt(fan_in)
    W = jax.random.uniform(ks[7], (D, 3 * D), jnp.float32, -bound, bound)
    bias = jax.random.uniform(ks[8], (D,), jnp.float32, -bound, bound)

    outs = gate_module_forward(text_emb, xReact_comet, xWant_comet,
                               xReact_sbert, xWant_sbert, xBefore, xAfter,
                               W, bias)
    outs = jax.block_until_ready(outs)

    refs = _reference(text_emb, xReact_comet, xWant_comet,
                      xReact_sbert, xWant_sbert, xBefore, xAfter, W, bias)
    for o, r in zip(outs, refs):
        assert o.shape == (B, S, D)
        err = float(jnp.max(jnp.abs(o.astype(jnp.float32) - r)))
        # Only deviation from the exact reference is the approximate EUP
        # reciprocal in the softmax denominator (~1e-3 relative on the gate),
        # giving ~5e-3 absolute error for N(0,1) data; 2e-2 is comfortable.
        assert err < 2e-2, f"mismatch vs reference: {err}"

    print("KERNEL_OK")
</pallas_src>

<mosaic_0001>
module attributes {stable_mosaic.version = 11 : i64} {
  func.func @_gate_kernel(%arg0: i32, %arg1: memref<16x128xf32, #tpu.memory_space<vmem>>, %arg2: memref<16x128xf32, #tpu.memory_space<vmem>>, %arg3: memref<16x128xf32, #tpu.memory_space<vmem>>, %arg4: memref<16x128xf32, #tpu.memory_space<vmem>>, %arg5: memref<16x128xf32, #tpu.memory_space<vmem>>, %arg6: memref<16x128xf32, #tpu.memory_space<vmem>>, %arg7: memref<16x128xf32, #tpu.memory_space<vmem>>, %arg8: memref<128x128xf32, #tpu.memory_space<vmem>>, %arg9: memref<128x128xf32, #tpu.memory_space<vmem>>, %arg10: memref<128x128xf32, #tpu.memory_space<vmem>>, %arg11: memref<1x128xf32, #tpu.memory_space<vmem>>, %arg12: memref<16x128xf32, #tpu.memory_space<vmem>>, %arg13: memref<16x128xf32, #tpu.memory_space<vmem>>, %arg14: memref<16x128xf32, #tpu.memory_space<vmem>>) attributes {dimension_semantics = [#tpu.dimension_semantics<parallel>], iteration_bounds = array<i64: 1>, scalar_prefetch = 0 : i64, scratch_operands = 0 : i64, tpu.core_type = #tpu.core_type<tc>, window_params = [{transform_indices = @transform_0, window_bounds = array<i64: 16, 128>}, {transform_indices = @transform_1, window_bounds = array<i64: 16, 128>}, {transform_indices = @transform_2, window_bounds = array<i64: 16, 128>}, {transform_indices = @transform_3, window_bounds = array<i64: 16, 128>}, {transform_indices = @transform_4, window_bounds = array<i64: 16, 128>}, {transform_indices = @transform_5, window_bounds = array<i64: 16, 128>}, {transform_indices = @transform_6, window_bounds = array<i64: 16, 128>}, {pipeline_mode = #tpu.pipeline_mode<synchronous>, transform_indices = @transform_7, window_bounds = array<i64: 128, 128>}, {pipeline_mode = #tpu.pipeline_mode<synchronous>, transform_indices = @transform_8, window_bounds = array<i64: 128, 128>}, {pipeline_mode = #tpu.pipeline_mode<synchronous>, transform_indices = @transform_9, window_bounds = array<i64: 128, 128>}, {pipeline_mode = #tpu.pipeline_mode<synchronous>, transform_indices = @transform_10, window_bounds = array<i64: 1, 128>}, {transform_indices = @transform_11, window_bounds = array<i64: 16, 128>}, {transform_indices = @transform_12, window_bounds = array<i64: 16, 128>}, {transform_indices = @transform_13, window_bounds = array<i64: 16, 128>}]} {
    %c0 = arith.constant 0 : index
    %c0_0 = arith.constant 0 : index
    %0 = vector.load %arg1[%c0, %c0_0] : memref<16x128xf32, #tpu.memory_space<vmem>>, vector<16x128xf32>
    %c0_1 = arith.constant 0 : index
    %c0_2 = arith.constant 0 : index
    %1 = vector.load %arg8[%c0_1, %c0_2] : memref<128x128xf32, #tpu.memory_space<vmem>>, vector<128x128xf32>
    %cst = arith.constant dense<0.000000e+00> : vector<16x128xf32>
    %2 = tpu.matmul %0, %1, %cst {dimension_numbers = #tpu.dot_dimension_numbers<[1], [0], [0], [1], [0, 0, 1, 1], [], []>} : vector<16x128xf32>, vector<128x128xf32>, vector<16x128xf32> -> vector<16x128xf32>
    %c0_3 = arith.constant 0 : index
    %c0_4 = arith.constant 0 : index
    %3 = vector.load %arg11[%c0_3, %c0_4] : memref<1x128xf32, #tpu.memory_space<vmem>>, vector<1x128xf32>
    %4 = vector.broadcast %3 : vector<1x128xf32> to vector<16x128xf32>
    %5 = arith.addf %2, %4 : vector<16x128xf32>
    %c0_5 = arith.constant 0 : index
    %c0_6 = arith.constant 0 : index
    %6 = vector.load %arg9[%c0_5, %c0_6] : memref<128x128xf32, #tpu.memory_space<vmem>>, vector<128x128xf32>
    %c0_7 = arith.constant 0 : index
    %c0_8 = arith.constant 0 : index
    %7 = vector.load %arg10[%c0_7, %c0_8] : memref<128x128xf32, #tpu.memory_space<vmem>>, vector<128x128xf32>
    %c0_9 = arith.constant 0 : index
    %c0_10 = arith.constant 0 : index
    %8 = vector.load %arg2[%c0_9, %c0_10] : memref<16x128xf32, #tpu.memory_space<vmem>>, vector<16x128xf32>
    %c0_11 = arith.constant 0 : index
    %c0_12 = arith.constant 0 : index
    %9 = vector.load %arg3[%c0_11, %c0_12] : memref<16x128xf32, #tpu.memory_space<vmem>>, vector<16x128xf32>
    %cst_13 = arith.constant dense<0.000000e+00> : vector<16x128xf32>
    %10 = tpu.matmul %8, %6, %cst_13 {dimension_numbers = #tpu.dot_dimension_numbers<[1], [0], [0], [1], [0, 0, 1, 1], [], []>} : vector<16x128xf32>, vector<128x128xf32>, vector<16x128xf32> -> vector<16x128xf32>
    %11 = arith.addf %5, %10 : vector<16x128xf32>
    %cst_14 = arith.constant dense<0.000000e+00> : vector<16x128xf32>
    %12 = tpu.matmul %9, %7, %cst_14 {dimension_numbers = #tpu.dot_dimension_numbers<[1], [0], [0], [1], [0, 0, 1, 1], [], []>} : vector<16x128xf32>, vector<128x128xf32>, vector<16x128xf32> -> vector<16x128xf32>
    %13 = arith.addf %11, %12 : vector<16x128xf32>
    %cst_15 = arith.constant dense<0xFF800000> : vector<16xf32>
    %14 = vector.multi_reduction <maximumf>, %13, %cst_15 [1] : vector<16x128xf32> to vector<16xf32>
    %15 = vector.shape_cast %14 : vector<16xf32> to vector<16x1xf32>
    %16 = vector.broadcast %15 : vector<16x1xf32> to vector<16x128xf32>
    %17 = arith.subf %13, %16 : vector<16x128xf32>
    %18 = math.exp %17 : vector<16x128xf32>
    %cst_16 = arith.constant dense<0.000000e+00> : vector<16xf32>
    %19 = vector.multi_reduction <add>, %18, %cst_16 [1] : vector<16x128xf32> to vector<16xf32>
    %20 = vector.shape_cast %19 : vector<16xf32> to vector<16x1xf32>
    %21 = vector.extract_strided_slice %13 {offsets = [0, 0], sizes = [16, 1], strides = [1, 1]} : vector<16x128xf32> to vector<16x1xf32>
    %22 = arith.subf %21, %15 : vector<16x1xf32>
    %23 = math.exp %22 : vector<16x1xf32>
    %24 = tpu.reciprocal %20 {approx = true} : vector<16x1xf32> -> vector<16x1xf32>
    %25 = arith.mulf %23, %24 : vector<16x1xf32>
    %26 = arith.subf %8, %9 : vector<16x128xf32>
    %27 = vector.broadcast %25 : vector<16x1xf32> to vector<16x128xf32>
    %28 = arith.mulf %27, %26 : vector<16x128xf32>
    %29 = arith.addf %9, %28 : vector<16x128xf32>
    %c0_17 = arith.constant 0 : index
    %c0_18 = arith.constant 0 : index
    %30 = vector.load %arg12[%c0_17, %c0_18] : memref<16x128xf32, #tpu.memory_space<vmem>>, vector<16x128xf32>
    tpu.vector_store %arg12[%c0_17, %c0_18], %29 {strides = array<i32>} : memref<16x128xf32, #tpu.memory_space<vmem>>, vector<16x128xf32>,
    %c0_19 = arith.constant 0 : index
    %c0_20 = arith.constant 0 : index
    %31 = vector.load %arg4[%c0_19, %c0_20] : memref<16x128xf32, #tpu.memory_space<vmem>>, vector<16x128xf32>
    %c0_21 = arith.constant 0 : index
    %c0_22 = arith.constant 0 : index
    %32 = vector.load %arg5[%c0_21, %c0_22] : memref<16x128xf32, #tpu.memory_space<vmem>>, vector<16x128xf32>
    %cst_23 = arith.constant dense<0.000000e+00> : vector<16x128xf32>
    %33 = tpu.matmul %31, %6, %cst_23 {dimension_numbers = #tpu.dot_dimension_numbers<[1], [0], [0], [1], [0, 0, 1, 1], [], []>} : vector<16x128xf32>, vector<128x128xf32>, vector<16x128xf32> -> vector<16x128xf32>
    %34 = arith.addf %5, %33 : vector<16x128xf32>
    %cst_24 = arith.constant dense<0.000000e+00> : vector<16x128xf32>
    %35 = tpu.matmul %32, %7, %cst_24 {dimension_numbers = #tpu.dot_dimension_numbers<[1], [0], [0], [1], [0, 0, 1, 1], [], []>} : vector<16x128xf32>, vector<128x128xf32>, vector<16x128xf32> -> vector<16x128xf32>
    %36 = arith.addf %34, %35 : vector<16x128xf32>
    %cst_25 = arith.constant dense<0xFF800000> : vector<16xf32>
    %37 = vector.multi_reduction <maximumf>, %36, %cst_25 [1] : vector<16x128xf32> to vector<16xf32>
    %38 = vector.shape_cast %37 : vector<16xf32> to vector<16x1xf32>
    %39 = vector.broadcast %38 : vector<16x1xf32> to vector<16x128xf32>
    %40 = arith.subf %36, %39 : vector<16x128xf32>
    %41 = math.exp %40 : vector<16x128xf32>
    %cst_26 = arith.constant dense<0.000000e+00> : vector<16xf32>
    %42 = vector.multi_reduction <add>, %41, %cst_26 [1] : vector<16x128xf32> to vector<16xf32>
    %43 = vector.shape_cast %42 : vector<16xf32> to vector<16x1xf32>
    %44 = vector.extract_strided_slice %36 {offsets = [0, 0], sizes = [16, 1], strides = [1, 1]} : vector<16x128xf32> to vector<16x1xf32>
    %45 = arith.subf %44, %38 : vector<16x1xf32>
    %46 = math.exp %45 : vector<16x1xf32>
    %47 = tpu.reciprocal %43 {approx = true} : vector<16x1xf32> -> vector<16x1xf32>
    %48 = arith.mulf %46, %47 : vector<16x1xf32>
    %49 = arith.subf %31, %32 : vector<16x128xf32>
    %50 = vector.broadcast %48 : vector<16x1xf32> to vector<16x128xf32>
    %51 = arith.mulf %50, %49 : vector<16x128xf32>
    %52 = arith.addf %32, %51 : vector<16x128xf32>
    %c0_27 = arith.constant 0 : index
    %c0_28 = arith.constant 0 : index
    %53 = vector.load %arg13[%c0_27, %c0_28] : memref<16x128xf32, #tpu.memory_space<vmem>>, vector<16x128xf32>
    tpu.vector_store %arg13[%c0_27, %c0_28], %52 {strides = array<i32>} : memref<16x128xf32, #tpu.memory_space<vmem>>, vector<16x128xf32>,
    %c0_29 = arith.constant 0 : index
    %c0_30 = arith.constant 0 : index
    %54 = vector.load %arg6[%c0_29, %c0_30] : memref<16x128xf32, #tpu.memory_space<vmem>>, vector<16x128xf32>
    %c0_31 = arith.constant 0 : index
    %c0_32 = arith.constant 0 : index
    %55 = vector.load %arg7[%c0_31, %c0_32] : memref<16x128xf32, #tpu.memory_space<vmem>>, vector<16x128xf32>
    %cst_33 = arith.constant dense<0.000000e+00> : vector<16x128xf32>
    %56 = tpu.matmul %54, %6, %cst_33 {dimension_numbers = #tpu.dot_dimension_numbers<[1], [0], [0], [1], [0, 0, 1, 1], [], []>} : vector<16x128xf32>, vector<128x128xf32>, vector<16x128xf32> -> vector<16x128xf32>
    %57 = arith.addf %5, %56 : vector<16x128xf32>
    %cst_34 = arith.constant dense<0.000000e+00> : vector<16x128xf32>
    %58 = tpu.matmul %55, %7, %cst_34 {dimension_numbers = #tpu.dot_dimension_numbers<[1], [0], [0], [1], [0, 0, 1, 1], [], []>} : vector<16x128xf32>, vector<128x128xf32>, vector<16x128xf32> -> vector<16x128xf32>
    %59 = arith.addf %57, %58 : vector<16x128xf32>
    %cst_35 = arith.constant dense<0xFF800000> : vector<16xf32>
    %60 = vector.multi_reduction <maximumf>, %59, %cst_35 [1] : vector<16x128xf32> to vector<16xf32>
    %61 = vector.shape_cast %60 : vector<16xf32> to vector<16x1xf32>
    %62 = vector.broadcast %61 : vector<16x1xf32> to vector<16x128xf32>
    %63 = arith.subf %59, %62 : vector<16x128xf32>
    %64 = math.exp %63 : vector<16x128xf32>
    %cst_36 = arith.constant dense<0.000000e+00> : vector<16xf32>
    %65 = vector.multi_reduction <add>, %64, %cst_36 [1] : vector<16x128xf32> to vector<16xf32>
    %66 = vector.shape_cast %65 : vector<16xf32> to vector<16x1xf32>
    %67 = vector.extract_strided_slice %59 {offsets = [0, 0], sizes = [16, 1], strides = [1, 1]} : vector<16x128xf32> to vector<16x1xf32>
    %68 = arith.subf %67, %61 : vector<16x1xf32>
    %69 = math.exp %68 : vector<16x1xf32>
    %70 = tpu.reciprocal %66 {approx = true} : vector<16x1xf32> -> vector<16x1xf32>
    %71 = arith.mulf %69, %70 : vector<16x1xf32>
    %72 = arith.subf %54, %55 : vector<16x128xf32>
    %73 = vector.broadcast %71 : vector<16x1xf32> to vector<16x128xf32>
    %74 = arith.mulf %73, %72 : vector<16x128xf32>
    %75 = arith.addf %55, %74 : vector<16x128xf32>
    %c0_37 = arith.constant 0 : index
    %c0_38 = arith.constant 0 : index
    %76 = vector.load %arg14[%c0_37, %c0_38] : memref<16x128xf32, #tpu.memory_space<vmem>>, vector<16x128xf32>
    tpu.vector_store %arg14[%c0_37, %c0_38], %75 {strides = array<i32>} : memref<16x128xf32, #tpu.memory_space<vmem>>, vector<16x128xf32>,
    return
  }
  func.func @transform_0(%arg0: i32) -> (i32, i32) {
    %c0_i32 = arith.constant 0 : i32
    %c0_i32_0 = arith.constant 0 : i32
    return %arg0, %c0_i32 : i32, i32
  }
  func.func @transform_1(%arg0: i32) -> (i32, i32) {
    %c0_i32 = arith.constant 0 : i32
    %c0_i32_0 = arith.constant 0 : i32
    return %arg0, %c0_i32 : i32, i32
  }
  func.func @transform_2(%arg0: i32) -> (i32, i32) {
    %c0_i32 = arith.constant 0 : i32
    %c0_i32_0 = arith.constant 0 : i32
    return %arg0, %c0_i32 : i32, i32
  }
  func.func @transform_3(%arg0: i32) -> (i32, i32) {
    %c0_i32 = arith.constant 0 : i32
    %c0_i32_0 = arith.constant 0 : i32
    return %arg0, %c0_i32 : i32, i32
  }
  func.func @transform_4(%arg0: i32) -> (i32, i32) {
    %c0_i32 = arith.constant 0 : i32
    %c0_i32_0 = arith.constant 0 : i32
    return %arg0, %c0_i32 : i32, i32
  }
  func.func @transform_5(%arg0: i32) -> (i32, i32) {
    %c0_i32 = arith.constant 0 : i32
    %c0_i32_0 = arith.constant 0 : i32
    return %arg0, %c0_i32 : i32, i32
  }
  func.func @transform_6(%arg0: i32) -> (i32, i32) {
    %c0_i32 = arith.constant 0 : i32
    %c0_i32_0 = arith.constant 0 : i32
    return %arg0, %c0_i32 : i32, i32
  }
  func.func @transform_7(%arg0: i32) -> (i32, i32) {
    %c0_i32 = arith.constant 0 : i32
    %c0_i32_0 = arith.constant 0 : i32
    %c0_i32_1 = arith.constant 0 : i32
    return %c0_i32, %c0_i32_0 : i32, i32
  }
  func.func @transform_8(%arg0: i32) -> (i32, i32) {
    %c0_i32 = arith.constant 0 : i32
    %c0_i32_0 = arith.constant 0 : i32
    %c0_i32_1 = arith.constant 0 : i32
    return %c0_i32, %c0_i32_0 : i32, i32
  }
  func.func @transform_9(%arg0: i32) -> (i32, i32) {
    %c0_i32 = arith.constant 0 : i32
    %c0_i32_0 = arith.constant 0 : i32
    %c0_i32_1 = arith.constant 0 : i32
    return %c0_i32, %c0_i32_0 : i32, i32
  }
  func.func @transform_10(%arg0: i32) -> (i32, i32) {
    %c0_i32 = arith.constant 0 : i32
    %c0_i32_0 = arith.constant 0 : i32
    %c0_i32_1 = arith.constant 0 : i32
    return %c0_i32, %c0_i32_0 : i32, i32
  }
  func.func @transform_11(%arg0: i32) -> (i32, i32) {
    %c0_i32 = arith.constant 0 : i32
    %c0_i32_0 = arith.constant 0 : i32
    return %arg0, %c0_i32 : i32, i32
  }
  func.func @transform_12(%arg0: i32) -> (i32, i32) {
    %c0_i32 = arith.constant 0 : i32
    %c0_i32_0 = arith.constant 0 : i32
    return %arg0, %c0_i32 : i32, i32
  }
  func.func @transform_13(%arg0: i32) -> (i32, i32) {
    %c0_i32 = arith.constant 0 : i32
    %c0_i32_0 = arith.constant 0 : i32
    return %arg0, %c0_i32 : i32, i32
  }
}

</mosaic_0001>

<bundles_post_ra>
// kernel: tpu_custom_call.1
= control target key start
LH: loop header
LB: loop body
LE: loop exit
PB: predicated region body
PF: predicated region fallthrough
CT: control target
= control target key end

     0   :  { %19 = vsyncpa [#allocation3], 0  ;;  %s2342_s0 = inlined_call_operand.hbm [shape: f32[16,128], index: 0, kind: input, shape index: {}]   ;;  %s2343_s1 = inlined_call_operand.hbm [shape: f32[16,128], index: 1, kind: input, shape index: {}]   ;;  %s2344_s2 = inlined_call_operand.hbm [shape: f32[16,128], index: 2, kind: input, shape index: {}]   ;;  %s2345_s3 = inlined_call_operand.hbm [shape: f32[16,128], index: 3, kind: input, shape index: {}]   ;;  %s2346_s4 = inlined_call_operand.hbm [shape: f32[16,128], index: 4, kind: input, shape index: {}]   ;;  %s2347_s5 = inlined_call_operand.vmem [shape: f32[16,128], index: 5, kind: input, shape index: {}]   ;;  %s2348_s6 = inlined_call_operand.hbm [shape: f32[16,128], index: 6, kind: input, shape index: {}]   ;;  %s2349_s7 = inlined_call_operand.hbm [shape: f32[128,128], index: 7, kind: input, shape index: {}]   ;;  %s2350_s8 = inlined_call_operand.hbm [shape: f32[128,128], index: 8, kind: input, shape index: {}]   ;;  %s2351_s9 = inlined_call_operand.hbm [shape: f32[128,128], index: 9, kind: input, shape index: {}]   ;;  %s2352_s10 = inlined_call_operand.vmem [shape: f32[1,128], index: 10, kind: input, shape index: {}]   ;;  %s2353_s11 = inlined_call_operand.hbm [shape: f32[16,128], index: 11, kind: output, shape index: {0}]   ;;  %s2354_s12 = inlined_call_operand.hbm [shape: f32[16,128], index: 12, kind: output, shape index: {1}]   ;;  %s2355_s13 = inlined_call_operand.hbm [shape: f32[16,128], index: 13, kind: output, shape index: {2}]  }
   0x1   :  { %20 = vsyncpa [#allocation6], 0 }
   0x2   :  { %21 = vsyncpa [#allocation9], 0 }
   0x3   :  { %22 = vsyncpa [#allocation12], 0 }
   0x4   :  { %23 = vsyncpa [#allocation15], 0 }
   0x5   :  { %24 = vsyncpa [#allocation4], 0 }
   0x6   :  { %25 = vsyncpa [#allocation19], 0  ;;  %s1858_s25 = smov [#allocation5]   ;;  %s1859_s27 = smov [#allocation8]  }
   0x7   :  { %s43_s26 = sshll.u32 %s1858_s25, 4  ;;  %s67_s28 = sshll.u32 %s1859_s27, 4  ;;  %s44_s26 = int_to_ptr.vmem [resolvable:$true] %s43_s26  ;;  %s1943_s28 = int_to_ptr.vmem [resolvable:$true] %s67_s28 }
   0x8   :  { %s1580_s14 = scalar_lea.hbm %s2343_s1, 256 }
   0x9   :  { %p1581_p0 = scmp.ne.s32.totalorder %s2343_s1, %s1580_s14  ;;  %p1584_p1 = scmp.lt.u32.totalorder %s1580_s14, %s2343_s1 }
   0xb   :  { %p1586_p2 = pnand %p1584_p1, %p1581_p0 }
   0xd   :  { %1589 = shalt.err (!%p1586_p2)
}
   0xe   :  { %s1590_s19 = scalar_lea.vmem %s44_s26, 256  ;;  %p1595_p4 = scmp.lt.s32.totalorder %s44_s26, %s44_s26 }
   0xf   :  { %p1591_p3 = scmp.ne.s32.totalorder %s44_s26, %s1590_s19  ;;  %p1596_p5 = scmp.lt.s32.totalorder %s1590_s19, %s1590_s19 }
  0x11   :  { %p1597_p6 = por %p1596_p5, %p1595_p4 }
  0x13   :  { %p1598_p7 = pnand %p1597_p6, %p1591_p3 }
  0x15   :  { %1601 = shalt.err (!%p1598_p7)
}
  0x16   :  { %s1860_s20 = smov 128   ;;  %s1861_s21 = smov 8  }
  0x17   :  { %49 = dma.hbm_to_vmem [thread:$0]  %s2343_s1, 256, %s44_s26, [#allocation6], %s1860_s20, %s1860_s20, %s1861_s21  }
  0x18   :  { %s1602_s27 = scalar_lea.hbm %s2345_s3, 256 }
  0x19   :  { %p1603_p8 = scmp.ne.s32.totalorder %s2345_s3, %s1602_s27  ;;  %p1606_p9 = scmp.lt.u32.totalorder %s1602_s27, %s2345_s3 }
  0x1b   :  { %p1608_p10 = pnand %p1606_p9, %p1603_p8 }
  0x1d   :  { %1611 = shalt.err (!%p1608_p10)
}
  0x1e   :  { %s1612_s16 = scalar_lea.vmem %s1943_s28, 256  ;;  %p1617_p12 = scmp.lt.s32.totalorder %s1943_s28, %s1943_s28 }
  0x1f   :  { %p1613_p11 = scmp.ne.s32.totalorder %s1943_s28, %s1612_s16  ;;  %p1618_p13 = scmp.lt.s32.totalorder %s1612_s16, %s1612_s16 }
  0x21   :  { %p1619_p0 = por %p1618_p13, %p1617_p12 }
  0x23   :  { %p1620_p1 = pnand %p1619_p0, %p1613_p11 }
  0x25   :  { %1623 = shalt.err (!%p1620_p1)
}
  0x26   :  { %73 = dma.hbm_to_vmem [thread:$0]  %s2345_s3, 256, %s1943_s28, [#allocation9], %s1860_s20, %s1860_s20, %s1861_s21  }
  0x27   :  { %s1862_s17 = smov [#allocation11]   ;;  %s1863_s19 = smov [#allocation14]  }
  0x28   :  { %s93_s18 = sshll.u32 %s1862_s17, 4  ;;  %s117_s22 = sshll.u32 %s1863_s19, 4  ;;  %s94_s18 = int_to_ptr.vmem [resolvable:$true] %s93_s18  ;;  %s1980_s22 = int_to_ptr.vmem [resolvable:$true] %s117_s22 }
  0x29   :  { %s1624_s25 = scalar_lea.hbm %s2348_s6, 256 }
  0x2a   :  { %p1625_p2 = scmp.ne.s32.totalorder %s2348_s6, %s1624_s25  ;;  %p1628_p3 = scmp.lt.u32.totalorder %s1624_s25, %s2348_s6 }
  0x2c   :  { %p1630_p4 = pnand %p1628_p3, %p1625_p2 }
  0x2e   :  { %1633 = shalt.err (!%p1630_p4)
}
  0x2f   :  { %s1634_s3 = scalar_lea.vmem %s94_s18, 256  ;;  %p1639_p6 = scmp.lt.s32.totalorder %s94_s18, %s94_s18 }
  0x30   :  { %p1635_p5 = scmp.ne.s32.totalorder %s94_s18, %s1634_s3  ;;  %p1640_p7 = scmp.lt.s32.totalorder %s1634_s3, %s1634_s3 }
  0x32   :  { %p1641_p8 = por %p1640_p7, %p1639_p6 }
  0x34   :  { %p1642_p9 = pnand %p1641_p8, %p1635_p5 }
  0x36   :  { %1645 = shalt.err (!%p1642_p9)
}
  0x37   :  { %99 = dma.hbm_to_vmem [thread:$0]  %s2348_s6, 256, %s94_s18, [#allocation12], %s1860_s20, %s1860_s20, %s1861_s21  }
  0x38   :  { %s1646_s26 = scalar_lea.hbm %s2350_s8, 2048 }
  0x39   :  { %p1647_p10 = scmp.ne.s32.totalorder %s2350_s8, %s1646_s26  ;;  %p1650_p11 = scmp.lt.u32.totalorder %s1646_s26, %s2350_s8 }
  0x3b   :  { %p1652_p12 = pnand %p1650_p11, %p1647_p10 }
  0x3d   :  { %1655 = shalt.err (!%p1652_p12)
}
  0x3e   :  { %s1656_s25 = scalar_lea.vmem %s1980_s22, 2048  ;;  %p1661_p0 = scmp.lt.s32.totalorder %s1980_s22, %s1980_s22 }
  0x3f   :  { %p1657_p13 = scmp.ne.s32.totalorder %s1980_s22, %s1656_s25  ;;  %p1662_p1 = scmp.lt.s32.totalorder %s1656_s25, %s1656_s25 }
  0x41   :  { %p1663_p2 = por %p1662_p1, %p1661_p0 }
  0x43   :  { %p1664_p3 = pnand %p1663_p2, %p1657_p13 }
  0x45   :  { %1667 = shalt.err (!%p1664_p3)
}
  0x46   :  { %123 = dma.hbm_to_vmem [thread:$0]  %s2350_s8, 2048, %s1980_s22, [#allocation15], %s1860_s20, %s1860_s20, %s1861_s21  }
  0x47   :  { %s1864_s27 = smov [#allocation2]   ;;  %s1865_s30 = smov [#allocation7]  }
  0x48   :  { %s31_s29 = sshll.u32 %s1864_s27, 4  ;;  %s55_s14 = sshll.u32 %s1865_s30, 4  ;;  %s32_s29 = int_to_ptr.vmem [resolvable:$true] %s31_s29  ;;  %s2017_s14 = int_to_ptr.vmem [resolvable:$true] %s55_s14 }
  0x49   :  { %s1668_s15 = scalar_lea.hbm %s2342_s0, 256 }
  0x4a   :  { %p1669_p4 = scmp.ne.s32.totalorder %s2342_s0, %s1668_s15  ;;  %p1672_p5 = scmp.lt.u32.totalorder %s1668_s15, %s2342_s0 }
  0x4c   :  { %p1674_p6 = pnand %p1672_p5, %p1669_p4 }
  0x4e   :  { %1677 = shalt.err (!%p1674_p6)
}
  0x4f   :  { %s1678_s8 = scalar_lea.vmem %s32_s29, 256  ;;  %p1683_p8 = scmp.lt.s32.totalorder %s32_s29, %s32_s29 }
  0x50   :  { %p1679_p7 = scmp.ne.s32.totalorder %s32_s29, %s1678_s8  ;;  %p1684_p9 = scmp.lt.s32.totalorder %s1678_s8, %s1678_s8 }
  0x52   :  { %p1685_p10 = por %p1684_p9, %p1683_p8 }
  0x54   :  { %p1686_p11 = pnand %p1685_p10, %p1679_p7 }
  0x56   :  { %1689 = shalt.err (!%p1686_p11)
}
  0x57   :  { %37 = dma.hbm_to_vmem [thread:$0]  %s2342_s0, 256, %s32_s29, [#allocation3], %s1860_s20, %s1860_s20, %s1861_s21  }
  0x58   :  { %s1690_s25 = scalar_lea.hbm %s2344_s2, 256 }
  0x59   :  { %p1691_p12 = scmp.ne.s32.totalorder %s2344_s2, %s1690_s25  ;;  %p1694_p13 = scmp.lt.u32.totalorder %s1690_s25, %s2344_s2 }
  0x5b   :  { %p1696_p0 = pnand %p1694_p13, %p1691_p12 }
  0x5d   :  { %1699 = shalt.err (!%p1696_p0)
}
  0x5e   :  { %s1700_s3 = scalar_lea.vmem %s2017_s14, 256  ;;  %p1705_p2 = scmp.lt.s32.totalorder %s2017_s14, %s2017_s14 }
  0x5f   :  { %p1701_p1 = scmp.ne.s32.totalorder %s2017_s14, %s1700_s3  ;;  %p1706_p3 = scmp.lt.s32.totalorder %s1700_s3, %s1700_s3 }
  0x61   :  { %p1707_p4 = por %p1706_p3, %p1705_p2 }
  0x63   :  { %p1708_p5 = pnand %p1707_p4, %p1701_p1 }
  0x65   :  { %1711 = shalt.err (!%p1708_p5)
}
  0x66   :  { %61 = dma.hbm_to_vmem [thread:$0]  %s2344_s2, 256, %s2017_s14, [#allocation6], %s1860_s20, %s1860_s20, %s1861_s21  }
  0x67   :  { %s1866_s28 = smov [#allocation10]   ;;  %s1867_s16 = smov [#allocation13]  }
  0x68   :  { %s79_s15 = sshll.u32 %s1866_s28, 4  ;;  %s105_s1 = sshll.u32 %s1867_s16, 4  ;;  %s80_s15 = int_to_ptr.vmem [resolvable:$true] %s79_s15  ;;  %s2054_s1 = int_to_ptr.vmem [resolvable:$true] %s105_s1 }
  0x69   :  { %s1712_s8 = scalar_lea.hbm %s2346_s4, 256 }
  0x6a   :  { %p1713_p6 = scmp.ne.s32.totalorder %s2346_s4, %s1712_s8  ;;  %p1716_p7 = scmp.lt.u32.totalorder %s1712_s8, %s2346_s4 }
  0x6c   :  { %p1718_p8 = pnand %p1716_p7, %p1713_p6 }
  0x6e   :  { %1721 = shalt.err (!%p1718_p8)
}
  0x6f   :  { %s1722_s2 = scalar_lea.vmem %s80_s15, 256  ;;  %p1727_p10 = scmp.lt.s32.totalorder %s80_s15, %s80_s15 }
  0x70   :  { %p1723_p9 = scmp.ne.s32.totalorder %s80_s15, %s1722_s2  ;;  %p1728_p11 = scmp.lt.s32.totalorder %s1722_s2, %s1722_s2 }
  0x72   :  { %p1729_p12 = por %p1728_p11, %p1727_p10 }
  0x74   :  { %p1730_p13 = pnand %p1729_p12, %p1723_p9 }
  0x76   :  { %1733 = shalt.err (!%p1730_p13)
}
  0x77   :  { %85 = dma.hbm_to_vmem [thread:$0]  %s2346_s4, 256, %s80_s15, [#allocation9], %s1860_s20, %s1860_s20, %s1861_s21  }
  0x78   :  { %s1734_s27 = scalar_lea.hbm %s2349_s7, 2048 }
  0x79   :  { %p1735_p0 = scmp.ne.s32.totalorder %s2349_s7, %s1734_s27  ;;  %p1738_p1 = scmp.lt.u32.totalorder %s1734_s27, %s2349_s7 }
  0x7b   :  { %p1740_p2 = pnand %p1738_p1, %p1735_p0 }
  0x7d   :  { %1743 = shalt.err (!%p1740_p2)
}
  0x7e   :  { %s1744_s28 = scalar_lea.vmem %s2054_s1, 2048  ;;  %p1749_p4 = scmp.lt.s32.totalorder %s2054_s1, %s2054_s1 }
  0x7f   :  { %p1745_p3 = scmp.ne.s32.totalorder %s2054_s1, %s1744_s28  ;;  %p1750_p5 = scmp.lt.s32.totalorder %s1744_s28, %s1744_s28 }
  0x81   :  { %p1751_p6 = por %p1750_p5, %p1749_p4 }
  0x83   :  { %p1752_p7 = pnand %p1751_p6, %p1745_p3 }
  0x85   :  { %1755 = shalt.err (!%p1752_p7)
}
  0x86   :  { %111 = dma.hbm_to_vmem [thread:$0]  %s2349_s7, 2048, %s2054_s1, [#allocation12], %s1860_s20, %s1860_s20, %s1861_s21  }
  0x87   :  { %s1868_s16 = smov [#allocation16]   ;;  %s1756_s22 = scalar_lea.hbm %s2351_s9, 2048 }
  0x88   :  { %s129_s26 = sshll.u32 %s1868_s16, 4  ;;  %p1757_p8 = scmp.ne.s32.totalorder %s2351_s9, %s1756_s22  ;;  %s130_s26 = int_to_ptr.vmem [resolvable:$true] %s129_s26 }
  0x89   :  { %p1760_p9 = scmp.lt.u32.totalorder %s1756_s22, %s2351_s9 }
  0x8b   :  { %p1762_p10 = pnand %p1760_p9, %p1757_p8 }
  0x8d   :  { %1765 = shalt.err (!%p1762_p10)
}
  0x8e   :  { %s1766_s14 = scalar_lea.vmem %s130_s26, 2048  ;;  %p1771_p12 = scmp.lt.s32.totalorder %s130_s26, %s130_s26 }
  0x8f   :  { %p1767_p11 = scmp.ne.s32.totalorder %s130_s26, %s1766_s14  ;;  %p1772_p13 = scmp.lt.s32.totalorder %s1766_s14, %s1766_s14 }
  0x91   :  { %p1773_p0 = por %p1772_p13, %p1771_p12 }
  0x93   :  { %p1774_p1 = pnand %p1773_p0, %p1767_p11 }
  0x95   :  { %1777 = shalt.err (!%p1774_p1)
}
  0x96   :  { %135 = dma.hbm_to_vmem [thread:$0]  %s2351_s9, 2048, %s130_s26, [#allocation15], %s1860_s20, %s1860_s20, %s1861_s21  }
  0x97   :  { %1844 = dma.done.wait [#allocation3], 256  }
  0x98   :  { %1845 = vsyncadd [#allocation3], 4294967040 }
  0x99   :  { %1846 = dma.done.wait [#allocation6], 512  }
  0x9a   :  { %1847 = vsyncadd [#allocation6], 4294966784 }
  0x9b   :  { %1848 = dma.done.wait [#allocation9], 512  }
  0x9c   :  { %1849 = vsyncadd [#allocation9], 4294966784 }
  0x9d   :  { %1850 = dma.done.wait [#allocation12], 2304  }
  0x9e   :  { %1851 = vsyncadd [#allocation12], 4294964992 }
  0x9f   :  { %1852 = dma.done.wait [#allocation15], 4096  }
  0xa0   :  { %1853 = vsyncadd [#allocation15], 4294963200  ;;  %v167_v0 = vld [vmem:[#allocation13] sm:$0xff]  ;;  %v168_v1 = vld [vmem:[#allocation13 + $0x8] sm:$0xff] }
  0xa1   :  { %v265_v2 = vld [vmem:[#allocation14] sm:$0xff]  ;;  %v1303_v3 = vpack.c.bf16 %v168_v1, %v167_v0  ;;  %v266_v4 = vld [vmem:[#allocation14 + $0x8] sm:$0xff]  ;;  %v169_v5 = vld [vmem:[#allocation13 + $0x10] sm:$0xff] }
  0xa2   :  { %v170_v6 = vld [vmem:[#allocation13 + $0x18] sm:$0xff]  ;;  %v2106_v7 = vpack.c.bf16 %v266_v4, %v265_v2  ;;  %v267_v9 = vld [vmem:[#allocation14 + $0x10] sm:$0xff]  ;;  %v171_v11 = vld [vmem:[#allocation13 + $0x20] sm:$0xff] }
  0xa3   :  { %v1307_v8 = vpack.c.bf16 %v170_v6, %v169_v5  ;;  %v268_v10 = vld [vmem:[#allocation14 + $0x18] sm:$0xff]  ;;  %1304 = vmatprep.subr.bf16.mxu0 %v1303_v3  ;;  %v172_v13 = vld [vmem:[#allocation13 + $0x28] sm:$0xff]  ;;  %v269_v14 = vld [vmem:[#allocation14 + $0x20] sm:$0xff] }
  0xa4   :  { %v2108_v12 = vpack.c.bf16 %v268_v10, %v267_v9  ;;  %v270_v15 = vld [vmem:[#allocation14 + $0x28] sm:$0xff]  ;;  %1336 = vmatprep.subr.bf16.mxu1 %v2106_v7  ;;  %1306 = vmatpush3.bf16.msra.mxu0 %v1303_v3  ;;  %v1311_v16 = vpack.c.bf16 %v172_v13, %v171_v11  ;;  %v173_v18 = vld [vmem:[#allocation13 + $0x30] sm:$0xff]  ;;  %v174_v19 = vld [vmem:[#allocation13 + $0x38] sm:$0xff] }
  0xa5   :  { %1338 = vmatpush3.bf16.msra.mxu1 %v2106_v7  ;;  %1308 = vmatprep.subr.bf16.mxu0 %v1307_v8  ;;  %v2113_v17 = vpack.c.bf16 %v270_v15, %v269_v14  ;;  %v271_v20 = vld [vmem:[#allocation14 + $0x30] sm:$0xff]  ;;  %v272_v21 = vld [vmem:[#allocation14 + $0x38] sm:$0xff]  ;;  %v1315_v22 = vpack.c.bf16 %v174_v19, %v173_v18  ;;  %v175_v24 = vld [vmem:[#allocation13 + $0x40] sm:$0xff] }
  0xa6   :  { %1340 = vmatprep.subr.bf16.mxu1 %v2108_v12  ;;  %v2117_v23 = vpack.c.bf16 %v272_v21, %v271_v20  ;;  %v176_v25 = vld [vmem:[#allocation13 + $0x48] sm:$0xff]  ;;  %v165_v26 = vld [vmem:[#allocation2] sm:$0xff]  ;;  %v2119_v29 = vld [vmem:[#allocation5] sm:$0xff] }
  0xa7   :  { %v273_v27 = vld [vmem:[#allocation14 + $0x40] sm:$0xff]  ;;  %v274_v28 = vld [vmem:[#allocation14 + $0x48] sm:$0xff]  ;;  %1090 = vmatprep.mubr.f32.mxu0 %v165_v26  ;;  %1125 = vmatprep.mubr.f32.mxu1 %v2119_v29  ;;  %v1319_v30 = vpack.c.bf16 %v176_v25, %v175_v24  ;;  %v177_v32 = vld [vmem:[#allocation13 + $0x50] sm:$0xff] }
  0xa8   :  { %1310 = vmatpush3.bf16.msra.mxu0 %v1307_v8  ;;  %v2124_v31 = vpack.c.bf16 %v274_v28, %v273_v27  ;;  %v178_v33 = vld [vmem:[#allocation13 + $0x58] sm:$0xff]  ;;  %v275_v34 = vld [vmem:[#allocation14 + $0x50] sm:$0xff]  ;;  %v179_v38 = vld [vmem:[#allocation13 + $0x60] sm:$0xff] }
  0xa9   :  { %1342 = vmatpush3.bf16.msra.mxu1 %v2108_v12  ;;  %1312 = vmatprep.subr.bf16.mxu0 %v1311_v16  ;;  %v276_v35 = vld [vmem:[#allocation14 + $0x58] sm:$0xff]  ;;  %v1323_v36 = vpack.c.bf16 %v178_v33, %v177_v32  ;;  %v180_v39 = vld [vmem:[#allocation13 + $0x68] sm:$0xff]  ;;  %v277_v40 = vld [vmem:[#allocation14 + $0x60] sm:$0xff] }
  0xaa   :  { %1344 = vmatprep.subr.bf16.mxu1 %v2113_v17  ;;  %v2128_v37 = vpack.c.bf16 %v276_v35, %v275_v34  ;;  %v278_v41 = vld [vmem:[#allocation14 + $0x68] sm:$0xff]  ;;  %v1327_v42 = vpack.c.bf16 %v180_v39, %v179_v38  ;;  %v181_v44 = vld [vmem:[#allocation13 + $0x70] sm:$0xff]  ;;  %v182_v45 = vld [vmem:[#allocation13 + $0x78] sm:$0xff] }
  0xab   :  { %v2132_v43 = vpack.c.bf16 %v278_v41, %v277_v40  ;;  %v279_v46 = vld [vmem:[#allocation14 + $0x70] sm:$0xff]  ;;  %v280_v47 = vld [vmem:[#allocation14 + $0x78] sm:$0xff]  ;;  %v1331_v48 = vpack.c.bf16 %v182_v45, %v181_v44  ;;  %v281_v50 = vld [vmem:[#allocation16] sm:$0xff] }
  0xac   :  { %1314 = vmatpush3.bf16.msra.mxu0 %v1311_v16  ;;  %v2136_v49 = vpack.c.bf16 %v280_v47, %v279_v46  ;;  %v282_v51 = vld [vmem:[#allocation16 + $0x8] sm:$0xff]  ;;  %v283_v53 = vld [vmem:[#allocation16 + $0x10] sm:$0xff]  ;;  %v284_v54 = vld [vmem:[#allocation16 + $0x18] sm:$0xff] }
  0xad   :  { %1346 = vmatpush3.bf16.msra.mxu1 %v2113_v17  ;;  %1316 = vmatprep.subr.bf16.mxu0 %v1315_v22  ;;  %v2140_v52 = vpack.c.bf16 %v282_v51, %v281_v50  ;;  %v166_v55 = vld [vmem:[#allocation2 + $0x8] sm:$0xff]  ;;  %v2144_v56 = vld [vmem:[#allocation5 + $0x8] sm:$0xff]  ;;  %v2147_v57 = vpack.c.bf16 %v284_v54, %v283_v53  ;;  %v2149_v58 = vld [vmem:[#allocation7] sm:$0xff] }
  0xae   :  { %1348 = vmatprep.subr.bf16.mxu1 %v2117_v23  ;;  %v285_v59 = vld [vmem:[#allocation16 + $0x20] sm:$0xff]  ;;  %v286_v60 = vld [vmem:[#allocation16 + $0x28] sm:$0xff]  ;;  %v2153_v61 = vld [vmem:[#allocation8] sm:$0xff] }
  0xaf   :  { %v2158_v62 = vpack.c.bf16 %v286_v60, %v285_v59  ;;  %v287_v63 = vld [vmem:[#allocation16 + $0x30] sm:$0xff]  ;;  %v288_v0 = vld [vmem:[#allocation16 + $0x38] sm:$0xff]  ;;  %v289_v2 = vld [vmem:[#allocation16 + $0x40] sm:$0xff] }
  0xb0   :  { %1318 = vmatpush3.bf16.msra.mxu0 %v1315_v22  ;;  %v2166_v1 = vpack.c.bf16 %v288_v0, %v287_v63  ;;  %v290_v3 = vld [vmem:[#allocation16 + $0x48] sm:$0xff]  ;;  %v291_v5 = vld [vmem:[#allocation16 + $0x50] sm:$0xff]  ;;  %v292_v6 = vld [vmem:[#allocation16 + $0x58] sm:$0xff] }
  0xb1   :  { %1350 = vmatpush3.bf16.msra.mxu1 %v2117_v23  ;;  %1320 = vmatprep.subr.bf16.mxu0 %v1319_v30  ;;  %v2172_v4 = vpack.c.bf16 %v290_v3, %v289_v2  ;;  %v2178_v8 = vpack.c.bf16 %v292_v6, %v291_v5  ;;  %v293_v9 = vld [vmem:[#allocation16 + $0x60] sm:$0xff]  ;;  %v294_v10 = vld [vmem:[#allocation16 + $0x68] sm:$0xff]  ;;  %v295_v13 = vld [vmem:[#allocation16 + $0x70] sm:$0xff] }
  0xb2   :  { %1352 = vmatprep.subr.bf16.mxu1 %v2124_v31  ;;  %v2184_v11 = vpack.c.bf16 %v294_v10, %v293_v9  ;;  %v296_v14 = vld [vmem:[#allocation16 + $0x78] sm:$0xff]  ;;  %v2200_v18 = vld [vmem:[#allocation7 + $0x8] sm:$0xff]  ;;  %v2205_v19 = vld [vmem:[#allocation10] sm:$0xff] }
  0xb3   :  { %v2190_v15 = vpack.c.bf16 %v296_v14, %v295_v13  ;;  %v2197_v16 = vld [vmem:[#allocation8 + $0x8] sm:$0xff]  ;;  %v2212_v20 = vld [vmem:[%s2347_s5] sm:$0xff] }
  0xb4   :  { %1322 = vmatpush3.bf16.msra.mxu0 %v1319_v30  ;;  %v2273_v21 = vld [vmem:[#allocation11 + $0x8] sm:$0xff]  ;;  %v931_v24 = vld [vmem:[%s2352_s10] ss:$0 sm:$0xff]  ;;  %s1870_s10 = smov [#allocation17]  }
  0xb5   :  { %1354 = vmatpush3.bf16.msra.mxu1 %v2124_v31  ;;  %1324 = vmatprep.subr.bf16.mxu0 %v1323_v36  ;;  %s884_s30 = sshll.u32 %s1870_s10, 4  ;;  %s885_s30 = int_to_ptr.vmem [resolvable:$true] %s884_s30 }
  0xb6   :  { %1356 = vmatprep.subr.bf16.mxu1 %v2128_v37  ;;  %s1778_s3 = scalar_lea.vmem %s885_s30, 256  ;;  %p1783_p3 = scmp.lt.s32.totalorder %s885_s30, %s885_s30 }
  0xb7   :  { %p1779_p2 = scmp.ne.s32.totalorder %s885_s30, %s1778_s3  ;;  %p1784_p4 = scmp.lt.s32.totalorder %s1778_s3, %s1778_s3 }
  0xb8   :  { %1326 = vmatpush3.bf16.msra.mxu0 %v1323_v36 }
  0xb9   :  { %1358 = vmatpush3.bf16.msra.mxu1 %v2128_v37  ;;  %1328 = vmatprep.subr.bf16.mxu0 %v1327_v42  ;;  %p1785_p5 = por %p1784_p4, %p1783_p3 }
  0xba   :  { %1360 = vmatprep.subr.bf16.mxu1 %v2132_v43 }
  0xbb   :  { %p1786_p6 = pnand %p1785_p5, %p1779_p2 }
  0xbc   :  { %1330 = vmatpush3.bf16.msra.mxu0 %v1327_v42 }
  0xbd   :  { %1362 = vmatpush3.bf16.msra.mxu1 %v2132_v43  ;;  %1332 = vmatprep.subr.bf16.mxu0 %v1331_v48 }
  0xbe   :  { %1364 = vmatprep.subr.bf16.mxu1 %v2136_v49 }
  0xc0   :  { %1334 = vmatpush3.bf16.msra.mxu0 %v1331_v48 }
  0xc1   :  { %1366 = vmatpush3.bf16.msra.mxu1 %v2136_v49  ;;  %1400 = vmatprep.subr.bf16.mxu0 %v2106_v7 }
  0xc2   :  { %1368 = vmatprep.subr.bf16.mxu1 %v2140_v52 }
  0xc3   :  { %1091 = vmatmul.mubr.f32.vlgmr.msra.gmra.mrb[0].mxu0 %v166_v55 }
  0xc4   :  { %1126 = vmatmul.mubr.f32.vlgmr.msra.gmra.mrb[0].mxu1 %v2144_v56  ;;  %1402 = vmatpush3.bf16.msra.mxu0 %v2106_v7 }
  0xc5   :  { %1370 = vmatpush3.bf16.msra.mxu1 %v2140_v52  ;;  %1404 = vmatprep.subr.bf16.mxu0 %v2108_v12 }
  0xc6   :  { %1372 = vmatprep.subr.bf16.mxu1 %v2147_v57  ;;  %1160 = vmatprep.mubr.f32.mxu1 %v2149_v58 }
  0xc7   :  { %1195 = vmatprep.mubr.f32.mxu0 %v2153_v61 }
  0xc8   :  { %1406 = vmatpush3.bf16.msra.mxu0 %v2108_v12 }
  0xc9   :  { %1374 = vmatpush3.bf16.msra.mxu1 %v2147_v57  ;;  %1408 = vmatprep.subr.bf16.mxu0 %v2113_v17 }
  0xca   :  { %1376 = vmatprep.subr.bf16.mxu1 %v2158_v62 }
  0xcc   :  { %1410 = vmatpush3.bf16.msra.mxu0 %v2113_v17 }
  0xcd   :  { %1378 = vmatpush3.bf16.msra.mxu1 %v2158_v62  ;;  %1412 = vmatprep.subr.bf16.mxu0 %v2117_v23 }
  0xce   :  { %1380 = vmatprep.subr.bf16.mxu1 %v2166_v1 }
  0xd0   :  { %1414 = vmatpush3.bf16.msra.mxu0 %v2117_v23 }
  0xd1   :  { %1382 = vmatpush3.bf16.msra.mxu1 %v2166_v1  ;;  %1416 = vmatprep.subr.bf16.mxu0 %v2124_v31 }
  0xd2   :  { %1384 = vmatprep.subr.bf16.mxu1 %v2172_v4 }
  0xd4   :  { %1418 = vmatpush3.bf16.msra.mxu0 %v2124_v31 }
  0xd5   :  { %1386 = vmatpush3.bf16.msra.mxu1 %v2172_v4  ;;  %1420 = vmatprep.subr.bf16.mxu0 %v2128_v37 }
  0xd6   :  { %1388 = vmatprep.subr.bf16.mxu1 %v2178_v8 }
  0xd8   :  { %1422 = vmatpush3.bf16.msra.mxu0 %v2128_v37 }
  0xd9   :  { %1390 = vmatpush3.bf16.msra.mxu1 %v2178_v8  ;;  %1424 = vmatprep.subr.bf16.mxu0 %v2132_v43 }
  0xda   :  { %1392 = vmatprep.subr.bf16.mxu1 %v2184_v11 }
  0xdc   :  { %1426 = vmatpush3.bf16.msra.mxu0 %v2132_v43 }
  0xdd   :  { %1394 = vmatpush3.bf16.msra.mxu1 %v2184_v11  ;;  %1428 = vmatprep.subr.bf16.mxu0 %v2136_v49 }
  0xde   :  { %1396 = vmatprep.subr.bf16.mxu1 %v2190_v15 }
  0xe0   :  { %1430 = vmatpush3.bf16.msra.mxu0 %v2136_v49 }
  0xe1   :  { %1398 = vmatpush3.bf16.msra.mxu1 %v2190_v15  ;;  %1432 = vmatprep.subr.bf16.mxu0 %v2140_v52 }
  0xe2   :  { %1464 = vmatprep.subr.bf16.mxu1 %v2106_v7 }
  0xe3   :  { %1196 = vmatmul.mubr.f32.vlgmr.msra.gmra.mrb[2].mxu0 %v2197_v16 }
  0xe4   :  { %1161 = vmatmul.mubr.f32.vlgmr.msra.gmra.mrb[0].mxu1 %v2200_v18  ;;  %1434 = vmatpush3.bf16.msra.mxu0 %v2140_v52 }
  0xe5   :  { %1466 = vmatpush3.bf16.msra.mxu1 %v2106_v7  ;;  %1436 = vmatprep.subr.bf16.mxu0 %v2147_v57  ;;  %v2244_v7 = vld [vmem:[#allocation10 + $0x8] sm:$0xff] }
  0xe6   :  { %1468 = vmatprep.subr.bf16.mxu1 %v2108_v12  ;;  %1230 = vmatprep.mubr.f32.mxu0 %v2205_v19 }
  0xe7   :  { %1265 = vmatprep.mubr.f32.mxu1 %v2212_v20 }
  0xe8   :  { %1438 = vmatpush3.bf16.msra.mxu0 %v2147_v57 }
  0xe9   :  { %1470 = vmatpush3.bf16.msra.mxu1 %v2108_v12  ;;  %1440 = vmatprep.subr.bf16.mxu0 %v2158_v62  ;;  %v2250_v12 = vld [vmem:[%s2347_s5 + $0x8] sm:$0xff] }
  0xea   :  { %1472 = vmatprep.subr.bf16.mxu1 %v2113_v17 }
  0xec   :  { %1442 = vmatpush3.bf16.msra.mxu0 %v2158_v62 }
  0xed   :  { %1474 = vmatpush3.bf16.msra.mxu1 %v2113_v17  ;;  %1444 = vmatprep.subr.bf16.mxu0 %v2166_v1  ;;  %v2253_v17 = vld [vmem:[#allocation11] sm:$0xff] }
  0xee   :  { %1476 = vmatprep.subr.bf16.mxu1 %v2117_v23 }
  0xf0   :  { %1446 = vmatpush3.bf16.msra.mxu0 %v2166_v1 }
  0xf1   :  { %1478 = vmatpush3.bf16.msra.mxu1 %v2117_v23  ;;  %1448 = vmatprep.subr.bf16.mxu0 %v2172_v4 }
  0xf2   :  { %1480 = vmatprep.subr.bf16.mxu1 %v2124_v31 }
  0xf4   :  { %1450 = vmatpush3.bf16.msra.mxu0 %v2172_v4 }
  0xf5   :  { %1482 = vmatpush3.bf16.msra.mxu1 %v2124_v31  ;;  %1452 = vmatprep.subr.bf16.mxu0 %v2178_v8 }
  0xf6   :  { %1484 = vmatprep.subr.bf16.mxu1 %v2128_v37 }
  0xf8   :  { %1454 = vmatpush3.bf16.msra.mxu0 %v2178_v8 }
  0xf9   :  { %1486 = vmatpush3.bf16.msra.mxu1 %v2128_v37  ;;  %1456 = vmatprep.subr.bf16.mxu0 %v2184_v11 }
  0xfa   :  { %1488 = vmatprep.subr.bf16.mxu1 %v2132_v43 }
  0xfc   :  { %1458 = vmatpush3.bf16.msra.mxu0 %v2184_v11 }
  0xfd   :  { %1490 = vmatpush3.bf16.msra.mxu1 %v2132_v43  ;;  %1460 = vmatprep.subr.bf16.mxu0 %v2190_v15 }
  0xfe   :  { %1492 = vmatprep.subr.bf16.mxu1 %v2136_v49 }
 0x100   :  { %1462 = vmatpush3.bf16.msra.mxu0 %v2190_v15 }
 0x101   :  { %1494 = vmatpush3.bf16.msra.mxu1 %v2136_v49 }
 0x102   :  { %1496 = vmatprep.subr.bf16.mxu1 %v2140_v52 }
 0x103   :  { %1231 = vmatmul.mubr.f32.vlgmr.msra.gmra.mrb[2].mxu0 %v2244_v7 }
 0x104   :  { %1266 = vmatmul.mubr.f32.vlgmr.msra.gmra.mrb[2].mxu1 %v2250_v12 }
 0x105   :  { %1498 = vmatpush3.bf16.msra.mxu1 %v2140_v52  ;;  %1300 = vmatprep.mubr.f32.mxu1 %v2253_v17  ;;  %v1869_v52 = vmov 0  }
 0x106   :  { %1500 = vmatprep.subr.bf16.mxu1 %v2147_v57  ;;  %1555 = vset.pattern.permute.xlu1 %v1869_v52 }
 0x107   :  { %1554 = vset.pattern.permute.xlu0 %v1869_v52 }
 0x109   :  { %1502 = vmatpush3.bf16.msra.mxu1 %v2147_v57 }
 0x10a   :  { %1504 = vmatprep.subr.bf16.mxu1 %v2158_v62 }
 0x10d   :  { %1506 = vmatpush3.bf16.msra.mxu1 %v2158_v62 }
 0x10e   :  { %1508 = vmatprep.subr.bf16.mxu1 %v2166_v1 }
 0x111   :  { %1510 = vmatpush3.bf16.msra.mxu1 %v2166_v1 }
 0x112   :  { %1512 = vmatprep.subr.bf16.mxu1 %v2172_v4 }
 0x115   :  { %1514 = vmatpush3.bf16.msra.mxu1 %v2172_v4 }
 0x116   :  { %1516 = vmatprep.subr.bf16.mxu1 %v2178_v8 }
 0x119   :  { %1518 = vmatpush3.bf16.msra.mxu1 %v2178_v8 }
 0x11a   :  { %1520 = vmatprep.subr.bf16.mxu1 %v2184_v11 }
 0x11d   :  { %1522 = vmatpush3.bf16.msra.mxu1 %v2184_v11 }
 0x11e   :  { %1524 = vmatprep.subr.bf16.mxu1 %v2190_v15 }
 0x121   :  { %1526 = vmatpush3.bf16.msra.mxu1 %v2190_v15 }
 0x124   :  { %1301 = vmatmul.mubr.f32.vlgmr.msra.gmra.mrb[2].mxu1 %v2273_v21 }
 0x196   :  { %v1092_v22 = vpop.f32.mrb[0].mxu0 }
 0x197   :  { %v256_v23 = vpop.f32.mrb[1].mxu0  ;;  %v262_v25 = vadd.f32 %v1092_v22, %v931_v24 }
 0x198   :  { %v257_v26 = vadd.f32 %v931_v24, %v256_v23 }
 0x1b7   :  { %v1162_v27 = vpop.f32.mrb[0].mxu1 }
 0x1b8   :  { %v1527_v28 = vadd.f32 %v1162_v27, %v262_v25  ;;  %v444_v30 = vpop.f32.mrb[1].mxu1 }
 0x1b9   :  { %v1528_v31 = vadd.f32 %v444_v30, %v257_v26 }
 0x1ba   :  { %457 = vmax.xlane.f32.xlu1 %v1527_v28 }
 0x1be   :  { %455 = vmax.xlane.f32.xlu1 %v1528_v31 }
 0x1d6   :  { %v1232_v32 = vpop.f32.mrb[2].mxu0 }
 0x1d7   :  { %v1529_v33 = vadd.f32 %v1232_v32, %v262_v25  ;;  %v638_v34 = vpop.f32.mrb[3].mxu0 }
 0x1d8   :  { %v1530_v35 = vadd.f32 %v638_v34, %v257_v26 }
 0x1d9   :  { %651 = vmax.xlane.f32.xlu0 %v1529_v33 }
 0x1dd   :  { %649 = vmax.xlane.f32.xlu0 %v1530_v35 }
 0x1f7   :  { %v1302_v36 = vpop.f32.mrb[2].mxu1 }
 0x1f8   :  { %v1531_v37 = vadd.f32 %v1302_v36, %v262_v25  ;;  %v832_v38 = vpop.f32.mrb[3].mxu1 }
 0x1f9   :  { %v1532_v39 = vadd.f32 %v832_v38, %v257_v26 }
 0x1fa   :  { %845 = vmax.xlane.f32.xlu1 %v1531_v37 }
 0x1fb   :  { %843 = vmax.xlane.f32.xlu0 %v1532_v39 }
 0x247   :  { %v458_v40 = vpop.xlane.xlu1 %457 }
 0x248   :  { %v460_v41 = vsub.f32 %v1527_v28, %v458_v40 }
 0x24a   :  { %v463_v42 = vmul.f32 1.442695, %v460_v41 }
 0x24b   :  { %v456_v43 = vpop.xlane.xlu1 %455 }
 0x24c   :  { %1556 = vpow2.f32 %v463_v42  ;;  %v459_v44 = vsub.f32 %v1528_v31, %v456_v43  ;;  %v474_v31 = vsub.f32 %v2144_v56, %v2200_v18 }
 0x24e   :  { %v461_v45 = vmul.f32 1.442695, %v459_v44 }
 0x250   :  { %1558 = vpow2.f32 %v461_v45 }
 0x256   :  { %v1557_v46 = vpop.eup %1556 }
 0x257   :  { %467 = vadd.xlane.f32.xlu1 %v1557_v46 }
 0x25a   :  { %v1559_v47 = vpop.eup %1558 }
 0x25b   :  { %465 = vadd.xlane.f32.xlu0 %v1559_v47 }
 0x266   :  { %v652_v48 = vpop.xlane.xlu0 %651 }
 0x267   :  { %v654_v49 = vsub.f32 %v1529_v33, %v652_v48  ;;  %v473_v33 = vsub.f32 %v2119_v29, %v2149_v58 }
 0x269   :  { %v657_v50 = vmul.f32 1.442695, %v654_v49 }
 0x26a   :  { %v650_v51 = vpop.xlane.xlu0 %649 }
 0x26b   :  { %1560 = vpow2.f32 %v657_v50  ;;  %v653_v53 = vsub.f32 %v1530_v35, %v650_v51 }
 0x26d   :  { %v655_v54 = vmul.f32 1.442695, %v653_v53 }
 0x26f   :  { %1562 = vpow2.f32 %v655_v54 }
 0x275   :  { %v1561_v55 = vpop.eup %1560 }
 0x276   :  { %661 = vadd.xlane.f32.xlu1 %v1561_v55 }
 0x279   :  { %v1563_v57 = vpop.eup %1562 }
 0x27a   :  { %659 = vadd.xlane.f32.xlu0 %v1563_v57 }
 0x287   :  { %v846_v59 = vpop.xlane.xlu1 %845 }
 0x288   :  { %v848_v60 = vsub.f32 %v1531_v37, %v846_v59  ;;  %v844_v62 = vpop.xlane.xlu0 %843 }
 0x289   :  { %v847_v63 = vsub.f32 %v1532_v39, %v844_v62 }
 0x28a   :  { %v851_v0 = vmul.f32 1.442695, %v848_v60 }
 0x28b   :  { %v849_v1 = vmul.f32 1.442695, %v847_v63 }
 0x28c   :  { %1564 = vpow2.f32 %v851_v0 }
 0x28d   :  { %1566 = vpow2.f32 %v849_v1 }
 0x296   :  { %v1565_v2 = vpop.eup %1564 }
 0x297   :  { %v1567_v3 = vpop.eup %1566  ;;  %855 = vadd.xlane.f32.xlu1 %v1565_v2 }
 0x298   :  { %853 = vadd.xlane.f32.xlu0 %v1567_v3 }
 0x2e4   :  { %v468_v4 = vpop.xlane.xlu1 %467 }
 0x2e5   :  { %1568 = vrcp.f32 %v468_v4 }
 0x2e8   :  { %v466_v5 = vpop.xlane.xlu0 %465 }
 0x2e9   :  { %1570 = vrcp.f32 %v466_v5 }
 0x2ef   :  { %v1569_v6 = vpop.eup %1568 }
 0x2f0   :  { %v472_v8 = vmul.f32 %v1569_v6, %v1557_v46 }
 0x2f2   :  { %482 = vperm.xlu1 %1555, %v472_v8  }
 0x2f3   :  { %v1571_v9 = vpop.eup %1570 }
 0x2f4   :  { %v471_v10 = vmul.f32 %v1571_v9, %v1559_v47 }
 0x2f6   :  { %477 = vperm.xlu0 %1554, %v471_v10  }
 0x303   :  { %v662_v11 = vpop.xlane.xlu1 %661 }
 0x304   :  { %1572 = vrcp.f32 %v662_v11 }
 0x307   :  { %v660_v13 = vpop.xlane.xlu0 %659 }
 0x308   :  { %1574 = vrcp.f32 %v660_v13 }
 0x30e   :  { %v1573_v14 = vpop.eup %1572 }
 0x30f   :  { %v666_v15 = vmul.f32 %v1573_v14, %v1561_v55 }
 0x311   :  { %676 = vperm.xlu1 %1555, %v666_v15  }
 0x312   :  { %v1575_v22 = vpop.eup %1574 }
 0x313   :  { %v665_v23 = vmul.f32 %v1575_v22, %v1563_v57 }
 0x315   :  { %671 = vperm.xlu1 %1555, %v665_v23  }
 0x324   :  { %v856_v24 = vpop.xlane.xlu1 %855 }
 0x325   :  { %v854_v25 = vpop.xlane.xlu0 %853 }
 0x326   :  { %1576 = vrcp.f32 %v854_v25 }
 0x327   :  { %1578 = vrcp.f32 %v856_v24 }
 0x330   :  { %v1577_v26 = vpop.eup %1576 }
 0x331   :  { %v859_v27 = vmul.f32 %v1577_v26, %v1567_v3  ;;  %v1579_v28 = vpop.eup %1578 }
 0x332   :  { %v860_v30 = vmul.f32 %v1579_v28, %v1565_v2 }
 0x333   :  { %865 = vperm.xlu1 %1555, %v859_v27  }
 0x337   :  { %870 = vperm.xlu1 %1555, %v860_v30  }
 0x371   :  { %v483_v32 = vpop.permute.xlu1 %482 }
 0x372   :  { %v486_v34 = vmul.f32 %v483_v32, %v474_v31 }
 0x374   :  { %v488_v35 = vadd.f32 %v486_v34, %v2200_v18 }
 0x375   :  { %v478_v36 = vpop.permute.xlu0 %477 }
 0x376   :  { %490 = vst [vmem:[#allocation17 + $0x8] sm:$0xff] %v488_v35  ;;  %v485_v37 = vmul.f32 %v478_v36, %v473_v33 }
 0x378   :  { %v487_v38 = vadd.f32 %v485_v37, %v2149_v58 }
 0x37a   :  { %489 = vst [vmem:[#allocation17] sm:$0xff] %v487_v38 }
 0x37b   :  { %1789 = shalt.err (!%p1786_p6)
}
 0x37c   :  { %s1790_s28 = scalar_lea.hbm %s2353_s11, 256 }
 0x37d   :  { %p1791_p7 = scmp.ne.s32.totalorder %s2353_s11, %s1790_s28  ;;  %p1794_p8 = scmp.lt.u32.totalorder %s1790_s28, %s2353_s11 }
 0x37f   :  { %p1796_p9 = pnand %p1794_p8, %p1791_p7 }
 0x381   :  { %1799 = shalt.err (!%p1796_p9)
}
 0x382   :  { %890 = dma.vmem_to_hbm [thread:$0]  %s885_s30, 256, %s2353_s11, [#allocation4], %s1860_s20, %s1860_s20, %s1861_s21   ;;  %v668_v29 = vsub.f32 %v2197_v16, %v2244_v7  ;;  %v667_v18 = vsub.f32 %v2153_v61, %v2205_v19 }
 0x383   :  { %s1871_s22 = smov [#allocation18]  }
 0x384   :  { %s896_s19 = sshll.u32 %s1871_s22, 4  ;;  %s897_s19 = int_to_ptr.vmem [resolvable:$true] %s896_s19 }
 0x385   :  { %s1800_s11 = scalar_lea.vmem %s897_s19, 256  ;;  %p1805_p11 = scmp.lt.s32.totalorder %s897_s19, %s897_s19 }
 0x386   :  { %p1801_p10 = scmp.ne.s32.totalorder %s897_s19, %s1800_s11  ;;  %p1806_p12 = scmp.lt.s32.totalorder %s1800_s11, %s1800_s11 }
 0x388   :  { %p1807_p13 = por %p1806_p12, %p1805_p11 }
 0x38a   :  { %p1808_p0 = pnand %p1807_p13, %p1801_p10 }
 0x390   :  { %v677_v56 = vpop.permute.xlu1 %676 }
 0x391   :  { %v680_v58 = vmul.f32 %v677_v56, %v668_v29 }
 0x393   :  { %v682_v39 = vadd.f32 %v680_v58, %v2244_v7 }
 0x394   :  { %v672_v40 = vpop.permute.xlu1 %671 }
 0x395   :  { %684 = vst [vmem:[#allocation18 + $0x8] sm:$0xff] %v682_v39  ;;  %v679_v41 = vmul.f32 %v672_v40, %v667_v18 }
 0x397   :  { %v681_v42 = vadd.f32 %v679_v41, %v2205_v19 }
 0x399   :  { %683 = vst [vmem:[#allocation18] sm:$0xff] %v681_v42 }
 0x39a   :  { %1811 = shalt.err (!%p1808_p0)
}
 0x39b   :  { %s1812_s2 = scalar_lea.hbm %s2354_s12, 256 }
 0x39c   :  { %p1813_p1 = scmp.ne.s32.totalorder %s2354_s12, %s1812_s2  ;;  %p1816_p2 = scmp.lt.u32.totalorder %s1812_s2, %s2354_s12 }
 0x39e   :  { %p1818_p3 = pnand %p1816_p2, %p1813_p1 }
 0x3a0   :  { %1821 = shalt.err (!%p1818_p3)
}
 0x3a1   :  { %902 = dma.vmem_to_hbm [thread:$0]  %s897_s19, 256, %s2354_s12, [#allocation19], %s1860_s20, %s1860_s20, %s1861_s21   ;;  %v861_v61 = vsub.f32 %v2212_v20, %v2253_v17  ;;  %v862_v7 = vsub.f32 %v2250_v12, %v2273_v21 }
 0x3a2   :  { %s1872_s18 = smov [#allocation20]  }
 0x3a3   :  { %s908_s5 = sshll.u32 %s1872_s18, 4  ;;  %s909_s5 = int_to_ptr.vmem [resolvable:$true] %s908_s5 }
 0x3a4   :  { %s1822_s12 = scalar_lea.vmem %s909_s5, 256  ;;  %p1827_p5 = scmp.lt.s32.totalorder %s909_s5, %s909_s5 }
 0x3a5   :  { %p1823_p4 = scmp.ne.s32.totalorder %s909_s5, %s1822_s12  ;;  %p1828_p6 = scmp.lt.s32.totalorder %s1822_s12, %s1822_s12 }
 0x3a7   :  { %p1829_p7 = por %p1828_p6, %p1827_p5 }
 0x3a9   :  { %p1830_p8 = pnand %p1829_p7, %p1823_p4 }
 0x3b2   :  { %v866_v16 = vpop.permute.xlu1 %865 }
 0x3b3   :  { %v873_v19 = vmul.f32 %v866_v16, %v861_v61 }
 0x3b5   :  { %v875_v43 = vadd.f32 %v873_v19, %v2253_v17 }
 0x3b6   :  { %v871_v44 = vpop.permute.xlu1 %870 }
 0x3b7   :  { %877 = vst [vmem:[#allocation20] sm:$0xff] %v875_v43  ;;  %v874_v45 = vmul.f32 %v871_v44, %v862_v7 }
 0x3b9   :  { %v876_v46 = vadd.f32 %v874_v45, %v2273_v21 }
 0x3bb   :  { %878 = vst [vmem:[#allocation20 + $0x8] sm:$0xff] %v876_v46 }
 0x3bc   :  { %1833 = shalt.err (!%p1830_p8)
}
 0x3bd   :  { %s1834_s30 = scalar_lea.hbm %s2355_s13, 256 }
 0x3be   :  { %p1835_p9 = scmp.ne.s32.totalorder %s2355_s13, %s1834_s30  ;;  %p1838_p10 = scmp.lt.u32.totalorder %s1834_s30, %s2355_s13 }
 0x3c0   :  { %p1840_p11 = pnand %p1838_p10, %p1835_p9 }
 0x3c2   :  { %1843 = shalt.err (!%p1840_p11)
}
 0x3c3   :  { %914 = dma.vmem_to_hbm [thread:$0]  %s909_s5, 256, %s2355_s13, [#allocation19], %s1860_s20, %s1860_s20, %s1861_s21  }
 0x3c4   :  { %1854 = dma.done.wait [#allocation4], 256  }
 0x3c5   :  { %1855 = vsyncadd [#allocation4], 4294967040 }
 0x3c6   :  { %1856 = dma.done.wait [#allocation19], 512  }
 0x3c7   :  { %1857 = vsyncadd [#allocation19], 4294966784 }
 0x3c8   :  { %924 = vsyncpa [#allocation3], 1 }
 0x3c9   :  { %925 = vsyncpa [#allocation6], 1 }
 0x3ca   :  { %926 = vsyncpa [#allocation9], 1 }
 0x3cb   :  { %927 = vsyncpa [#allocation12], 1 }
 0x3cc   :  { %928 = vsyncpa [#allocation15], 1 }
 0x3cd   :  { %929 = vsyncpa [#allocation4], 1 }
 0x3ce   :  { %930 = vsyncpa [#allocation19], 1 }

</bundles_post_ra>
